<compile_context>
chip_gen: v7x
topology: tpu7x:2x2x1
jax: 0.10.0
libtpu: 0.0.40
codegen_flags: <defaults>
</compile_context>

<pallas_src>
import functools

import jax
import jax.numpy as jnp
from jax.experimental import pallas as pl
from jax.experimental.pallas import tpu as pltpu

LANE = 128      # vreg lane width
SUBLANE = 8     # vreg sublane count (f32)


def _round_up(n, m):
    return ((n + m - 1) // m) * m


def _make_kernel(dot_dtype):
    """MLP kernel in transposed layout: activations are (features, batch_tile)."""

    def kernel(x_ref, w1_ref, b1_ref, w2_ref, b2_ref, w3_ref, b3_ref, o_ref):
        # x_ref: (in_p, tb) -- features on sublanes, batch on lanes.
        x = x_ref[...].astype(dot_dtype)
        # fc1 + ReLU
        h = jnp.dot(w1_ref[...].astype(dot_dtype), x,
                    preferred_element_type=jnp.float32)
        h = jnp.maximum(h + b1_ref[...], 0.0)
        # dropout: identity at inference time.
        # fc2 + ReLU
        h = jnp.dot(w2_ref[...].astype(dot_dtype), h.astype(dot_dtype),
                    preferred_element_type=jnp.float32)
        h = jnp.maximum(h + b2_ref[...], 0.0)
        # fc3 + ReLU (the PyTorch module applies ReLU after fc3)
        h = jnp.dot(w3_ref[...].astype(dot_dtype), h.astype(dot_dtype),
                    preferred_element_type=jnp.float32)
        h = jnp.maximum(h + b3_ref[...], 0.0)
        o_ref[...] = h.astype(o_ref.dtype)

    return kernel


def harth_classifier_forward(x, params, *, batch_tile=1024, dot_dtype=jnp.float32):
    """x: (B, input_size) f32; params: dict of w1,b1,w2,b2,w3,b3.

    Weights are stored (in_features, out_features), biases (1, out_features),
    i.e. the reference computes x @ W + b (== PyTorch x @ W.T + b).
    `dot_dtype=jnp.bfloat16` routes the MXU inputs through bf16 (f32 accumulate)
    on v6e/v7x; elementwise math stays f32 (v5e-safe). Default is full f32.
    """
    w1, b1 = params["w1"], params["b1"]
    w2, b2 = params["w2"], params["b2"]
    w3, b3 = params["w3"], params["b3"]

    B, in_size = x.shape
    hid = w1.shape[1]
    hid2 = w2.shape[1]
    out_size = w3.shape[1]

    # --- host-side packing: transpose to (out, in) and pad features to 8 ---
    in_p = _round_up(in_size, SUBLANE)
    h1_p = _round_up(hid, SUBLANE)
    h2_p = _round_up(hid2, SUBLANE)
    out_p = _round_up(out_size, SUBLANE)

    w1t = jnp.pad(w1.T, ((0, h1_p - hid), (0, in_p - in_size)))
    w2t = jnp.pad(w2.T, ((0, h2_p - hid2), (0, h1_p - hid)))
    w3t = jnp.pad(w3.T, ((0, out_p - out_size), (0, h2_p - hid2)))
    b1t = jnp.pad(b1.T, ((0, h1_p - hid), (0, 0)))
    b2t = jnp.pad(b2.T, ((0, h2_p - hid2), (0, 0)))
    b3t = jnp.pad(b3.T, ((0, out_p - out_size), (0, 0)))

    # --- batch on the lane axis, tiled by tb lanes ---
    tb = _round_up(min(batch_tile, _round_up(B, LANE)), LANE)
    b_pad = _round_up(B, tb)
    xt = jnp.pad(x.T, ((0, in_p - in_size), (0, b_pad - B)))

    grid = (b_pad // tb,)

    def const_spec(shape):
        # Constant block index -> DMA'd once, stays resident in VMEM.
        return pl.BlockSpec(shape, lambda i: (0, 0))

    # Scheduler hints: true FLOPs and (padded) bytes moved.
    dsize = 4
    flops = 2 * B * (in_size * hid + hid * hid2 + hid2 * out_size)
    weight_bytes = dsize * (w1t.size + b1t.size + w2t.size + b2t.size
                            + w3t.size + b3t.size)
    bytes_accessed = dsize * (xt.size + out_p * b_pad) + weight_bytes

    # Double-buffered per-tile I/O + kernel temporaries + resident weights + headroom.
    tile_io_bytes = dsize * tb * (in_p + out_p)
    interm_bytes = dsize * tb * (h1_p + h2_p + out_p)
    vmem_limit = int(max(8 * 1024 * 1024,
                         2 * tile_io_bytes + interm_bytes + 2 * weight_bytes
                         + (2 << 20)))

    out_t = pl.pallas_call(
        _make_kernel(dot_dtype),
        out_shape=jax.ShapeDtypeStruct((out_p, b_pad), jnp.float32),
        grid=grid,
        in_specs=[
            pl.BlockSpec((in_p, tb), lambda i: (0, i)),   # x^T tile (batch on lanes)
            const_spec(w1t.shape), const_spec(b1t.shape),
            const_spec(w2t.shape), const_spec(b2t.shape),
            const_spec(w3t.shape), const_spec(b3t.shape),
        ],
        out_specs=pl.BlockSpec((out_p, tb), lambda i: (0, i)),
        compiler_params=pltpu.CompilerParams(
            dimension_semantics=("parallel",),   # batch tiles independent (megacore on v7x)
            vmem_limit_bytes=vmem_limit,
        ),
        cost_estimate=pl.CostEstimate(
            flops=int(flops), transcendentals=0, bytes_accessed=int(bytes_accessed)),
    )(xt, w1t, b1t, w2t, b2t, w3t, b3t)

    # Drop padding, return in the original (B, out_size) layout.
    return out_t[:out_size, :B].T


def init_params(key, input_size, hidden_size, output_size):
    """Deterministic synthetic init (PyTorch-Linear-like uniform scaling)."""
    hidden_half = hidden_size // 2
    ks = jax.random.split(key, 6)

    def lin(kw, kb, fan_in, fan_out):
        bound = 1.0 / jnp.sqrt(jnp.float32(fan_in))
        w = jax.random.uniform(kw, (fan_in, fan_out), jnp.float32, -bound, bound)
        b = jax.random.uniform(kb, (1, fan_out), jnp.float32, -bound, bound)
        return w, b

    w1, b1 = lin(ks[0], ks[1], input_size, hidden_size)
    w2, b2 = lin(ks[2], ks[3], hidden_size, hidden_half)
    w3, b3 = lin(ks[4], ks[5], hidden_half, output_size)
    return {"w1": w1, "b1": b1, "w2": w2, "b2": b2, "w3": w3, "b3": b3}


def reference_forward(x, p):
    h = jnp.maximum(x @ p["w1"] + p["b1"], 0.0)
    h = jnp.maximum(h @ p["w2"] + p["b2"], 0.0)
    h = jnp.maximum(h @ p["w3"] + p["b3"], 0.0)  # module applies ReLU after fc3
    return h


if __name__ == "__main__":
    # HARTH: 6 sensor features, 12 activity classes; hidden=32 (hidden_half=16).
    batch, input_size, hidden_size, output_size = 8, 6, 32, 12

    key = jax.random.PRNGKey(0)
    kx, kp, kx2 = jax.random.split(key, 3)
    x = jax.random.normal(kx, (batch, input_size), dtype=jnp.float32)
    params = init_params(kp, input_size, hidden_size, output_size)

    # Small-batch path (single tile).
    fwd = jax.jit(harth_classifier_forward)
    out = jax.block_until_ready(fwd(x, params))
    ref = reference_forward(x, params)
    assert out.shape == (batch, output_size)
    assert jnp.allclose(out, ref, atol=1e-4, rtol=1e-4), "mismatch vs reference (small batch)"

    # Multi-tile path: exercise the batch grid + index_maps with a ragged batch.
    x2 = jax.random.normal(kx2, (300, input_size), dtype=jnp.float32)
    fwd_tiled = jax.jit(functools.partial(harth_classifier_forward, batch_tile=128))
    out2 = jax.block_until_ready(fwd_tiled(x2, params))
    ref2 = reference_forward(x2, params)
    assert out2.shape == (300, output_size)
    assert jnp.allclose(out2, ref2, atol=1e-4, rtol=1e-4), "mismatch vs reference (tiled batch)"

    print("KERNEL_OK")
</pallas_src>

<mosaic_0001>
module attributes {stable_mosaic.version = 11 : i64} {
  func.func @kernel(%arg0: i32, %arg1: memref<8x128xf32, #tpu.memory_space<vmem>>, %arg2: memref<32x8xf32, #tpu.memory_space<vmem>>, %arg3: memref<32x1xf32, #tpu.memory_space<vmem>>, %arg4: memref<16x32xf32, #tpu.memory_space<vmem>>, %arg5: memref<16x1xf32, #tpu.memory_space<vmem>>, %arg6: memref<16x16xf32, #tpu.memory_space<vmem>>, %arg7: memref<16x1xf32, #tpu.memory_space<vmem>>, %arg8: memref<16x128xf32, #tpu.memory_space<vmem>>) attributes {dimension_semantics = [#tpu.dimension_semantics<parallel>], iteration_bounds = array<i64: 1>, scalar_prefetch = 0 : i64, scratch_operands = 0 : i64, tpu.core_type = #tpu.core_type<tc>, window_params = [{transform_indices = @transform_0, window_bounds = array<i64: 8, 128>}, {pipeline_mode = #tpu.pipeline_mode<synchronous>, transform_indices = @transform_1, window_bounds = array<i64: 32, 8>}, {pipeline_mode = #tpu.pipeline_mode<synchronous>, transform_indices = @transform_2, window_bounds = array<i64: 32, 1>}, {pipeline_mode = #tpu.pipeline_mode<synchronous>, transform_indices = @transform_3, window_bounds = array<i64: 16, 32>}, {pipeline_mode = #tpu.pipeline_mode<synchronous>, transform_indices = @transform_4, window_bounds = array<i64: 16, 1>}, {pipeline_mode = #tpu.pipeline_mode<synchronous>, transform_indices = @transform_5, window_bounds = array<i64: 16, 16>}, {pipeline_mode = #tpu.pipeline_mode<synchronous>, transform_indices = @transform_6, window_bounds = array<i64: 16, 1>}, {transform_indices = @transform_7, window_bounds = array<i64: 16, 128>}]} {
    %c0 = arith.constant 0 : index
    %c0_0 = arith.constant 0 : index
    %0 = vector.load %arg1[%c0, %c0_0] : memref<8x128xf32, #tpu.memory_space<vmem>>, vector<8x128xf32>
    %c0_1 = arith.constant 0 : index
    %c0_2 = arith.constant 0 : index
    %1 = vector.load %arg2[%c0_1, %c0_2] : memref<32x8xf32, #tpu.memory_space<vmem>>, vector<32x8xf32>
    %cst = arith.constant dense<0.000000e+00> : vector<32x128xf32>
    %2 = tpu.matmul %1, %0, %cst {dimension_numbers = #tpu.dot_dimension_numbers<[1], [0], [0], [1], [0, 0, 1, 1], [], []>} : vector<32x8xf32>, vector<8x128xf32>, vector<32x128xf32> -> vector<32x128xf32>
    %c0_3 = arith.constant 0 : index
    %c0_4 = arith.constant 0 : index
    %3 = vector.load %arg3[%c0_3, %c0_4] : memref<32x1xf32, #tpu.memory_space<vmem>>, vector<32x1xf32>
    %4 = vector.broadcast %3 : vector<32x1xf32> to vector<32x128xf32>
    %5 = arith.addf %2, %4 : vector<32x128xf32>
    %cst_5 = arith.constant 0.000000e+00 : f32
    %6 = vector.broadcast %cst_5 : f32 to vector<32x128xf32>
    %7 = arith.maximumf %5, %6 : vector<32x128xf32>
    %c0_6 = arith.constant 0 : index
    %c0_7 = arith.constant 0 : index
    %8 = vector.load %arg4[%c0_6, %c0_7] : memref<16x32xf32, #tpu.memory_space<vmem>>, vector<16x32xf32>
    %cst_8 = arith.constant dense<0.000000e+00> : vector<16x128xf32>
    %9 = tpu.matmul %8, %7, %cst_8 {dimension_numbers = #tpu.dot_dimension_numbers<[1], [0], [0], [1], [0, 0, 1, 1], [], []>} : vector<16x32xf32>, vector<32x128xf32>, vector<16x128xf32> -> vector<16x128xf32>
    %c0_9 = arith.constant 0 : index
    %c0_10 = arith.constant 0 : index
    %10 = vector.load %arg5[%c0_9, %c0_10] : memref<16x1xf32, #tpu.memory_space<vmem>>, vector<16x1xf32>
    %11 = vector.broadcast %10 : vector<16x1xf32> to vector<16x128xf32>
    %12 = arith.addf %9, %11 : vector<16x128xf32>
    %cst_11 = arith.constant 0.000000e+00 : f32
    %13 = vector.broadcast %cst_11 : f32 to vector<16x128xf32>
    %14 = arith.maximumf %12, %13 : vector<16x128xf32>
    %c0_12 = arith.constant 0 : index
    %c0_13 = arith.constant 0 : index
    %15 = vector.load %arg6[%c0_12, %c0_13] : memref<16x16xf32, #tpu.memory_space<vmem>>, vector<16x16xf32>
    %cst_14 = arith.constant dense<0.000000e+00> : vector<16x128xf32>
    %16 = tpu.matmul %15, %14, %cst_14 {dimension_numbers = #tpu.dot_dimension_numbers<[1], [0], [0], [1], [0, 0, 1, 1], [], []>} : vector<16x16xf32>, vector<16x128xf32>, vector<16x128xf32> -> vector<16x128xf32>
    %c0_15 = arith.constant 0 : index
    %c0_16 = arith.constant 0 : index
    %17 = vector.load %arg7[%c0_15, %c0_16] : memref<16x1xf32, #tpu.memory_space<vmem>>, vector<16x1xf32>
    %18 = vector.broadcast %17 : vector<16x1xf32> to vector<16x128xf32>
    %19 = arith.addf %16, %18 : vector<16x128xf32>
    %cst_17 = arith.constant 0.000000e+00 : f32
    %20 = vector.broadcast %cst_17 : f32 to vector<16x128xf32>
    %21 = arith.maximumf %19, %20 : vector<16x128xf32>
    %c0_18 = arith.constant 0 : index
    %c0_19 = arith.constant 0 : index
    %22 = vector.load %arg8[%c0_18, %c0_19] : memref<16x128xf32, #tpu.memory_space<vmem>>, vector<16x128xf32>
    tpu.vector_store %arg8[%c0_18, %c0_19], %21 {strides = array<i32>} : memref<16x128xf32, #tpu.memory_space<vmem>>, vector<16x128xf32>,
    return
  }
  func.func @transform_0(%arg0: i32) -> (i32, i32) {
    %c0_i32 = arith.constant 0 : i32
    %c0_i32_0 = arith.constant 0 : i32
    return %c0_i32, %arg0 : i32, i32
  }
  func.func @transform_1(%arg0: i32) -> (i32, i32) {
    %c0_i32 = arith.constant 0 : i32
    %c0_i32_0 = arith.constant 0 : i32
    %c0_i32_1 = arith.constant 0 : i32
    return %c0_i32, %c0_i32_0 : i32, i32
  }
  func.func @transform_2(%arg0: i32) -> (i32, i32) {
    %c0_i32 = arith.constant 0 : i32
    %c0_i32_0 = arith.constant 0 : i32
    %c0_i32_1 = arith.constant 0 : i32
    return %c0_i32, %c0_i32_0 : i32, i32
  }
  func.func @transform_3(%arg0: i32) -> (i32, i32) {
    %c0_i32 = arith.constant 0 : i32
    %c0_i32_0 = arith.constant 0 : i32
    %c0_i32_1 = arith.constant 0 : i32
    return %c0_i32, %c0_i32_0 : i32, i32
  }
  func.func @transform_4(%arg0: i32) -> (i32, i32) {
    %c0_i32 = arith.constant 0 : i32
    %c0_i32_0 = arith.constant 0 : i32
    %c0_i32_1 = arith.constant 0 : i32
    return %c0_i32, %c0_i32_0 : i32, i32
  }
  func.func @transform_5(%arg0: i32) -> (i32, i32) {
    %c0_i32 = arith.constant 0 : i32
    %c0_i32_0 = arith.constant 0 : i32
    %c0_i32_1 = arith.constant 0 : i32
    return %c0_i32, %c0_i32_0 : i32, i32
  }
  func.func @transform_6(%arg0: i32) -> (i32, i32) {
    %c0_i32 = arith.constant 0 : i32
    %c0_i32_0 = arith.constant 0 : i32
    %c0_i32_1 = arith.constant 0 : i32
    return %c0_i32, %c0_i32_0 : i32, i32
  }
  func.func @transform_7(%arg0: i32) -> (i32, i32) {
    %c0_i32 = arith.constant 0 : i32
    %c0_i32_0 = arith.constant 0 : i32
    return %c0_i32, %arg0 : i32, i32
  }
}

</mosaic_0001>

<bundles_post_ra>
// kernel: harth_classifier_forward.1
= control target key start
LH: loop header
LB: loop body
LE: loop exit
PB: predicated region body
PF: predicated region fallthrough
CT: control target
= control target key end

     0   :  { %vm55_vm0 = vcmask 64512   ;;  %v423_v3 = vmov 0   ;;  %vm171_vm1 = vcmask 261120   ;;  %vm269_vm2 = vcmask 130048   ;;  %s527_s0 = inlined_call_operand.vmem [shape: f32[8,128], index: 0, kind: input, shape index: {}]   ;;  %s528_s1 = inlined_call_operand.vmem [shape: f32[32,8], index: 1, kind: input, shape index: {}]   ;;  %s529_s2 = inlined_call_operand.vmem [shape: f32[32,1], index: 2, kind: input, shape index: {}]   ;;  %s530_s4 = inlined_call_operand.vmem [shape: f32[16,1], index: 4, kind: input, shape index: {}]   ;;  %s531_s6 = inlined_call_operand.vmem [shape: f32[16,1], index: 6, kind: input, shape index: {}]   ;;  %s532_s3 = inlined_call_operand.vmem [shape: f32[16,32], index: 3, kind: input, shape index: {}]   ;;  %s533_s5 = inlined_call_operand.vmem [shape: f32[16,16], index: 5, kind: input, shape index: {}]   ;;  %s534_s7 = inlined_call_operand.vmem [shape: f32[16,128], index: 7, kind: output, shape index: {}]  }
   0x1   :  { %v26_v0 = vld [vmem:[%s527_s0] sm:$0xff]  ;;  %v28_v2 = vld [vmem:[%s528_s1 + $0x8] sm:$0xff]  ;;  %421 = vset.pattern.permute.xlu0 %v423_v3  ;;  %422 = vset.pattern.permute.xlu1 %v423_v3  ;;  %v29_v4 = vld [vmem:[%s528_s1 + $0x10] sm:$0xff] }
   0x2   :  { %v27_v1 = vld [vmem:[%s528_s1] sm:$0xff]  ;;  %382 = vmatprep.subr.mxu0 %v26_v0  ;;  %v33_v6 = vld [vmem:[%s529_s2 + $0x10] sm:$0xff]  ;;  %v32_v7 = vld [vmem:[%s529_s2 + $0x8] sm:$0xff] }
   0x3   :  { %384 = vmatprep.mubr.msk.f32.mxu0 %vm55_vm0, %v27_v1  ;;  %v31_v5 = vld [vmem:[%s529_s2] sm:$0xff]  ;;  %383 = vmatpush3.msra.mxu0 %v26_v0  ;;  %v30_v8 = vld [vmem:[%s528_s1 + $0x18] sm:$0xff]  ;;  %v160_v11 = vld [vmem:[%s530_s4 + $0x8] sm:$0xff] }
   0x4   :  { %37 = vperm.xlu0 %421, %v31_v5   ;;  %385 = vmatmul.mubr.msk.f32.vlgmr.msra.gmra.mrb[0].mxu0 %vm55_vm0, %v28_v2  ;;  %v34_v9 = vld [vmem:[%s529_s2 + $0x18] sm:$0xff]  ;;  %v159_v10 = vld [vmem:[%s530_s4] sm:$0xff]  ;;  %v258_v13 = vld [vmem:[%s531_s6 + $0x8] sm:$0xff] }
   0x5   :  { %47 = vperm.xlu1 %422, %v33_v6   ;;  %387 = vmatprep.mubr.msk.f32.mxu0 %vm55_vm0, %v29_v4  ;;  %v257_v12 = vld [vmem:[%s531_s6] sm:$0xff]  ;;  %v158_v33 = vld [vmem:[%s532_s3 + $0x8] sm:$0xff] }
   0x6   :  { %v157_v14 = vld [vmem:[%s532_s3] sm:$0xff]  ;;  %v256_v44 = vld [vmem:[%s533_s5 + $0x8] sm:$0xff] }
   0x7   :  { %398 = vmatprep.mubr.msk.f32.mxu1 %vm171_vm1, %v157_v14  ;;  %v255_v34 = vld [vmem:[%s533_s5] sm:$0xff] }
   0x8   :  { %42 = vperm.xlu0 %421, %v32_v7   ;;  %388 = vmatmul.mubr.msk.f32.gmra.mrb[2].mxu0 %vm55_vm0, %v30_v8 }
   0x9   :  { %52 = vperm.xlu1 %422, %v34_v9   ;;  %405 = vmatprep.mubr.msk.f32.mxu0 %vm269_vm2, %v255_v34 }
   0xc   :  { %163 = vperm.xlu0 %421, %v159_v10  }
   0xd   :  { %168 = vperm.xlu1 %422, %v160_v11  }
  0x10   :  { %261 = vperm.xlu0 %421, %v257_v12  }
  0x11   :  { %266 = vperm.xlu1 %422, %v258_v13  }
  0x83   :  { %v38_v15 = vpop.permute.xlu0 %37 }
  0x84   :  { %v48_v16 = vpop.permute.xlu1 %47 }
  0x87   :  { %v43_v17 = vpop.permute.xlu0 %42 }
  0x88   :  { %v53_v23 = vpop.permute.xlu1 %52 }
  0x8b   :  { %v164_v37 = vpop.permute.xlu0 %163 }
  0x8c   :  { %v169_v35 = vpop.permute.xlu1 %168 }
  0x8f   :  { %v262_v47 = vpop.permute.xlu0 %261 }
  0x90   :  { %v267_v45 = vpop.permute.xlu1 %266 }
  0xd7   :  { %v386_v18 = vpop.f32.mrb[0].mxu0 }
  0xd8   :  { %v140_v19 = vadd.f32 %v386_v18, %v43_v17  ;;  %v134_v20 = vpop.f32.mrb[1].mxu0 }
  0xd9   :  { %v135_v21 = vadd.f32 %v134_v20, %v38_v15 }
  0xda   :  { %v154_v22 = vmax.f32 %v140_v19, 0.0 }
  0xdb   :  { %v153_v24 = vmax.f32 %v135_v21, 0.0  ;;  %v389_v25 = vpop.f32.mrb[2].mxu0 }
  0xdc   :  { %v150_v26 = vadd.f32 %v389_v25, %v53_v23  ;;  %v144_v27 = vpop.f32.mrb[3].mxu0 }
  0xdd   :  { %v145_v28 = vadd.f32 %v144_v27, %v48_v16  ;;  %v408_v29 = vpack.c.bf16 %v154_v22, %v153_v24 }
  0xde   :  { %v156_v30 = vmax.f32 %v150_v26, 0.0 }
  0xdf   :  { %v155_v31 = vmax.f32 %v145_v28, 0.0  ;;  %409 = vmatprep.subr.bf16.mxu1 %v408_v29 }
  0xe0   :  { %411 = vmatpush3.bf16.msra.mxu1 %v408_v29 }
  0xe1   :  { %v412_v32 = vpack.c.bf16 %v156_v30, %v155_v31 }
  0xe3   :  { %413 = vmatprep.subr.bf16.mxu1 %v412_v32 }
  0xe4   :  { %415 = vmatpush3.bf16.msra.mxu1 %v412_v32 }
  0xe7   :  { %399 = vmatmul.mubr.msk.f32.vlgmr.msra.gmra.mrb[0].mxu1 %vm171_vm1, %v158_v33 }
 0x1ba   :  { %v400_v36 = vpop.f32.mrb[0].mxu1 }
 0x1bb   :  { %v250_v38 = vadd.f32 %v400_v36, %v169_v35  ;;  %v244_v39 = vpop.f32.mrb[1].mxu1 }
 0x1bc   :  { %v245_v40 = vadd.f32 %v244_v39, %v164_v37 }
 0x1bd   :  { %v254_v41 = vmax.f32 %v250_v38, 0.0 }
 0x1be   :  { %v253_v42 = vmax.f32 %v245_v40, 0.0 }
 0x1c0   :  { %v416_v43 = vpack.c.bf16 %v254_v41, %v253_v42 }
 0x1c2   :  { %417 = vmatprep.subr.bf16.mxu0 %v416_v43 }
 0x1c3   :  { %419 = vmatpush3.bf16.msra.mxu0 %v416_v43 }
 0x1c6   :  { %406 = vmatmul.mubr.msk.f32.vlgmr.msra.gmra.mrb[4].mxu0 %vm269_vm2, %v256_v44 }
 0x299   :  { %v407_v46 = vpop.f32.mrb[4].mxu0 }
 0x29a   :  { %v348_v48 = vadd.f32 %v407_v46, %v267_v45  ;;  %v342_v49 = vpop.f32.mrb[5].mxu0 }
 0x29b   :  { %v343_v50 = vadd.f32 %v342_v49, %v262_v47 }
 0x29c   :  { %v352_v51 = vmax.f32 %v348_v48, 0.0 }
 0x29d   :  { %v351_v52 = vmax.f32 %v343_v50, 0.0 }
 0x29e   :  { %354 = vst [vmem:[%s534_s7 + $0x8] sm:$0xff] %v352_v51 }
 0x29f   :  { %353 = vst [vmem:[%s534_s7] sm:$0xff] %v351_v52 }

</bundles_post_ra>
